<compile_context>
chip_gen: v7x
topology: tpu7x:2x2x1
jax: 0.10.0
libtpu: 0.0.40
codegen_flags: <defaults>
</compile_context>

<pallas_src>
import jax
import jax.numpy as jnp
from jax.experimental import pallas as pl
from jax.experimental.pallas import tpu as pltpu

_LANE = 128
_SUBLANE = 8


def mlp_kernel(x_ref, w1_ref, w2_ref, o_ref):
    # x_ref : (tb, input_size)
    # w1_ref: (input_size, hidden)      -- MXU-native (K, N), grid-invariant
    # w2_ref: (hidden, out_padded)      -- MXU-native (K, N), lane-padded, grid-invariant
    # o_ref : (tb, out_padded)
    h = jnp.dot(x_ref[...], w1_ref[...], preferred_element_type=jnp.float32)
    h = jnp.tanh(h)  # f32 on the EUP (kept f32 on all chip generations)
    # TODO(synk): for very large hidden (>=2048) with big tb, K-tile this second
    # matmul (fori_loop over hidden chunks + f32 VMEM accumulator scratch) to
    # bound vreg/VMEM pressure instead of holding all of h as one value.
    y = jnp.dot(h.astype(w2_ref.dtype), w2_ref[...], preferred_element_type=jnp.float32)
    o_ref[...] = jnp.tanh(y).astype(o_ref.dtype)


def prepare_weights(w1, w2, *, compute_dtype=None):
    """One-time weight preparation (hoist / cache this outside the hot path).

    w1: (hidden, input_size)  = nn.Linear(input_size, hidden,  bias=False).weight
    w2: (output_size, hidden) = nn.Linear(hidden, output_size, bias=False).weight

    Returns (w1t, w2tp, output_size):
      w1t : (input_size, hidden)                      MXU-native (K, N)
      w2tp: (hidden, out_padded), out_padded % 128==0 MXU-native (K, N), zero-padded
    """
    hidden, _ = w1.shape
    output_size, hid2 = w2.shape
    assert hid2 == hidden
    if compute_dtype is not None:
        w1 = w1.astype(compute_dtype)
        w2 = w2.astype(compute_dtype)
    w1t = jnp.asarray(w1).T                    # (input_size, hidden)
    w2t = jnp.asarray(w2).T                    # (hidden, output_size)
    out_padded = pl.cdiv(output_size, _LANE) * _LANE
    if out_padded != output_size:
        w2t = jnp.zeros((hidden, out_padded), w2t.dtype).at[:, :output_size].set(w2t)
    return w1t, w2t, output_size


def _choose_tb(B):
    # Blocks must satisfy (tb % 8 == 0) or (tb == B).  Policy:
    #   * B < 16 (or not sublane-aligned): one full-batch block.
    #   * otherwise: >= 2 grid steps (both v7x TensorCores busy), tiles up to
    #     512 rows for large B to amortize per-step overhead on v5e/v6e.
    if B < 16 or B % _SUBLANE != 0:
        return B
    tb = min(B // 2, 512)
    return max(_SUBLANE, (tb // _SUBLANE) * _SUBLANE)


def mlp_apply(x, w1t, w2tp, output_size, *, tb=None, compute_dtype=None):
    """Fused forward given prepared weights (see prepare_weights)."""
    B, input_size = x.shape
    in2, hidden = w1t.shape
    hid2, out_padded = w2tp.shape
    assert in2 == input_size and hid2 == hidden and out_padded % _LANE == 0

    out_dtype = x.dtype
    if compute_dtype is not None:
        x = x.astype(compute_dtype)
        w1t = w1t.astype(compute_dtype)
        w2tp = w2tp.astype(compute_dtype)

    if tb is None:
        tb = _choose_tb(B)
    grid = (pl.cdiv(B, tb),)

    w_item = jnp.dtype(x.dtype).itemsize
    o_item = jnp.dtype(out_dtype).itemsize
    # VMEM footprint: grid-resident weights (x2 for default double-buffering) +
    # double-buffered x/out tiles + f32 intermediates, plus slack.  Capped at
    # 64 MiB so the limit is valid on v7x as well as v5e/v6e.
    footprint = (2 * (w1t.size + w2tp.size) * w_item
                 + 2 * tb * (input_size * w_item + out_padded * o_item)
                 + 2 * tb * (hidden + out_padded) * 4
                 + (4 << 20))
    vmem_limit = int(min(max(footprint, 32 << 20), 64 << 20))

    cost = pl.CostEstimate(
        flops=2 * B * (input_size * hidden + hidden * out_padded),
        transcendentals=B * (hidden + out_padded),
        bytes_accessed=(x.size * w_item
                        + w1t.size * w_item
                        + w2tp.size * w_item
                        + B * out_padded * o_item),
    )

    out = pl.pallas_call(
        mlp_kernel,
        out_shape=jax.ShapeDtypeStruct((B, out_padded), out_dtype),
        grid_spec=pltpu.PrefetchScalarGridSpec(
            num_scalar_prefetch=0,
            grid=grid,
            in_specs=[
                pl.BlockSpec((tb, input_size), lambda i: (i, 0)),
                # Grid-invariant whole-weight blocks (constant index_maps ->
                # DMA'd once, resident across batch tiles).
                # TODO(synk): for very large weights on v7x (64 MiB VMEM),
                # single-buffer these blocks or K-tile W2 instead.
                pl.BlockSpec((input_size, hidden), lambda i: (0, 0)),
                pl.BlockSpec((hidden, out_padded), lambda i: (0, 0)),
            ],
            out_specs=pl.BlockSpec((tb, out_padded), lambda i: (i, 0)),
        ),
        compiler_params=pltpu.CompilerParams(
            dimension_semantics=("parallel",),
            vmem_limit_bytes=vmem_limit,
        ),
        cost_estimate=cost,
    )(x, w1t, w2tp)

    if out_padded != output_size:
        # For output-heavy consumers, keep the padded slab downstream instead of
        # paying this extra HBM pass; negligible for tiny output_size.
        out = out[:, :output_size]
    return out


def mlp_forward(x, w1, w2, *, tb=None, compute_dtype=None):
    """tanh(linear2(tanh(linear1(x)))) with PyTorch nn.Linear weight layouts.

    x : (B, input_size)
    w1: (hidden, input_size)
    w2: (output_size, hidden)
    compute_dtype: optional MXU-operand dtype (e.g. jnp.bfloat16); accumulation
                   and both tanh's remain f32, output keeps x's dtype.
    """
    w1t, w2tp, output_size = prepare_weights(w1, w2, compute_dtype=compute_dtype)
    return mlp_apply(x, w1t, w2tp, output_size, tb=tb, compute_dtype=compute_dtype)


if __name__ == "__main__":
    # Shapes consistent with MLP(input_size=16, output_size=8, hidden=128).
    batch, input_size, hidden, output_size = 16, 16, 128, 8

    key = jax.random.PRNGKey(0)
    kx, k1, k2 = jax.random.split(key, 3)

    x = jax.random.normal(kx, (batch, input_size), dtype=jnp.float32)
    # PyTorch nn.Linear weight layouts: (out_features, in_features), no bias.
    w1 = jax.random.uniform(k1, (hidden, input_size), jnp.float32,
                            minval=-1.0, maxval=1.0) / jnp.sqrt(input_size)
    w2 = jax.random.uniform(k2, (output_size, hidden), jnp.float32,
                            minval=-1.0, maxval=1.0) / jnp.sqrt(hidden)

    # Reference (same math as the PyTorch forward).
    ref = jnp.tanh(jnp.tanh(x @ w1.T) @ w2.T)

    # f32 path, batch=16 -> tb=8, grid=(2,) (exercises the multi-step parallel grid).
    out = jax.block_until_ready(mlp_forward(x, w1, w2))
    assert out.shape == (batch, output_size)
    assert jnp.allclose(out, ref, atol=2e-5, rtol=2e-5)

    # Odd small batch (single full-batch block path).
    out5 = jax.block_until_ready(mlp_forward(x[:5], w1, w2))
    assert out5.shape == (5, output_size)
    assert jnp.allclose(out5, ref[:5], atol=2e-5, rtol=2e-5)

    # bf16 MXU-operand fast path (accumulation/tanh stay f32): looser tolerance.
    out_bf16 = jax.block_until_ready(mlp_forward(x, w1, w2, compute_dtype=jnp.bfloat16))
    assert out_bf16.shape == (batch, output_size)
    assert jnp.allclose(out_bf16, ref, atol=5e-2, rtol=5e-2)

    print("KERNEL_OK")
</pallas_src>

<mosaic_0001>
module attributes {stable_mosaic.version = 11 : i64} {
  func.func @mlp_kernel(%arg0: i32, %arg1: memref<8x16xf32, #tpu.memory_space<vmem>>, %arg2: memref<16x128xf32, #tpu.memory_space<vmem>>, %arg3: memref<128x128xf32, #tpu.memory_space<vmem>>, %arg4: memref<8x128xf32, #tpu.memory_space<vmem>>) attributes {dimension_semantics = [#tpu.dimension_semantics<parallel>], iteration_bounds = array<i64: 2>, scalar_prefetch = 0 : i64, scratch_operands = 0 : i64, tpu.core_type = #tpu.core_type<tc>, window_params = [{transform_indices = @transform_0, window_bounds = array<i64: 8, 16>}, {pipeline_mode = #tpu.pipeline_mode<synchronous>, transform_indices = @transform_1, window_bounds = array<i64: 16, 128>}, {pipeline_mode = #tpu.pipeline_mode<synchronous>, transform_indices = @transform_2, window_bounds = array<i64: 128, 128>}, {transform_indices = @transform_3, window_bounds = array<i64: 8, 128>}]} {
    %c0 = arith.constant 0 : index
    %c0_0 = arith.constant 0 : index
    %0 = vector.load %arg1[%c0, %c0_0] : memref<8x16xf32, #tpu.memory_space<vmem>>, vector<8x16xf32>
    %c0_1 = arith.constant 0 : index
    %c0_2 = arith.constant 0 : index
    %1 = vector.load %arg2[%c0_1, %c0_2] : memref<16x128xf32, #tpu.memory_space<vmem>>, vector<16x128xf32>
    %cst = arith.constant dense<0.000000e+00> : vector<8x128xf32>
    %2 = tpu.matmul %0, %1, %cst {dimension_numbers = #tpu.dot_dimension_numbers<[1], [0], [0], [1], [0, 0, 1, 1], [], []>} : vector<8x16xf32>, vector<16x128xf32>, vector<8x128xf32> -> vector<8x128xf32>
    %3 = math.tanh %2 : vector<8x128xf32>
    %c0_3 = arith.constant 0 : index
    %c0_4 = arith.constant 0 : index
    %4 = vector.load %arg3[%c0_3, %c0_4] : memref<128x128xf32, #tpu.memory_space<vmem>>, vector<128x128xf32>
    %cst_5 = arith.constant dense<0.000000e+00> : vector<8x128xf32>
    %5 = tpu.matmul %3, %4, %cst_5 {dimension_numbers = #tpu.dot_dimension_numbers<[1], [0], [0], [1], [0, 0, 1, 1], [], []>} : vector<8x128xf32>, vector<128x128xf32>, vector<8x128xf32> -> vector<8x128xf32>
    %6 = math.tanh %5 : vector<8x128xf32>
    %c0_6 = arith.constant 0 : index
    %c0_7 = arith.constant 0 : index
    %7 = vector.load %arg4[%c0_6, %c0_7] : memref<8x128xf32, #tpu.memory_space<vmem>>, vector<8x128xf32>
    tpu.vector_store %arg4[%c0_6, %c0_7], %6 {strides = array<i32>} : memref<8x128xf32, #tpu.memory_space<vmem>>, vector<8x128xf32>,
    return
  }
  func.func @transform_0(%arg0: i32) -> (i32, i32) {
    %c0_i32 = arith.constant 0 : i32
    %c0_i32_0 = arith.constant 0 : i32
    return %arg0, %c0_i32 : i32, i32
  }
  func.func @transform_1(%arg0: i32) -> (i32, i32) {
    %c0_i32 = arith.constant 0 : i32
    %c0_i32_0 = arith.constant 0 : i32
    %c0_i32_1 = arith.constant 0 : i32
    return %c0_i32, %c0_i32_0 : i32, i32
  }
  func.func @transform_2(%arg0: i32) -> (i32, i32) {
    %c0_i32 = arith.constant 0 : i32
    %c0_i32_0 = arith.constant 0 : i32
    %c0_i32_1 = arith.constant 0 : i32
    return %c0_i32, %c0_i32_0 : i32, i32
  }
  func.func @transform_3(%arg0: i32) -> (i32, i32) {
    %c0_i32 = arith.constant 0 : i32
    %c0_i32_0 = arith.constant 0 : i32
    return %arg0, %c0_i32 : i32, i32
  }
}

</mosaic_0001>

<bundles_post_ra>
// kernel: tpu_custom_call.1
= control target key start
LH: loop header
LB: loop body
LE: loop exit
PB: predicated region body
PF: predicated region fallthrough
CT: control target
= control target key end

     0   :  { %8 = vsyncpa [#allocation3], 0  ;;  %s1086_s0 = inlined_call_operand.hbm [shape: f32[16,16], index: 0, kind: input, shape index: {}]   ;;  %s1087_s1 = inlined_call_operand.hbm [shape: f32[16,128], index: 1, kind: input, shape index: {}]   ;;  %s1088_s2 = inlined_call_operand.hbm [shape: f32[128,128], index: 2, kind: input, shape index: {}]   ;;  %s1089_s3 = inlined_call_operand.hbm [shape: f32[16,128], index: 3, kind: output, shape index: {}]  }
   0x1   :  { %10 = vsyncpa [#allocation3 + $0x1], 0 }
   0x2   :  { %11 = vsyncpa [#allocation6], 0 }
   0x3   :  { %12 = vsyncpa [#allocation4], 0 }
   0x4   :  { %14 = vsyncpa [#allocation4 + $0x1], 0  ;;  %s853_s12 = smov 0   ;;  %s855_s13 = smov 0  }
   0x5   :  { %s857_s14 = smov 0   ;;  %s859_s15 = smov 0  }
   0x6 LB: > { %s874_s16 = sadd.s32 4294967295, %s822_s15   ;;  %s484_s17 = sadd.s32 4294967294, %s822_s15   ;;  %s822_s15 = sphi %s859_s15, %s1109_s15   ;;  %s818_s14 = sphi %s857_s14, %s1108_s14   ;;  %s814_s13 = sphi %s855_s13, %s1107_s13   ;;  %s810_s12 = sphi %s853_s12, %s1106_s12  }
   0x7   : > { %p40_p0 = scmp.ne.s32.totalorder %s814_s13, %s810_s12  ;;  %p1090_p1 = scmp.eq.s32.totalorder %s874_s16, 0 }
   0x8   : > { %p112_p3 = scmp.eq.s32.totalorder %s484_s17, 1  ;;  %p485_p5 = scmp.ge.s32.totalorder %s822_s15, 1 }
   0x9   : > { %p883_p4 = por %p1090_p1, %p40_p0  ;;  %p119_p7 = scmp.lt.s32.totalorder %s822_s15, 3 }
   0xa   : > { %p888_p6 = por %p112_p3, %p40_p0  ;;  %s824_s21 = smov [#allocation5]  }
   0xb   : > { %s1093_s18 = scalar_select %p883_p4, 1, 0 }
   0xc   : > { %s1094_s19 = scalar_select %p888_p6, 1, 0 }
   0xd   : > { %p893_p8 = pnand %p485_p5, %p119_p7  ;;  %s131_s22 = sshll.u32 %s824_s21, 4  ;;  %s897_s22 = int_to_ptr.vmem [resolvable:$true] %s131_s22 }
   0xe   : > { %s825_s24 = smov [#allocation7]   ;;  %s666_s28 = scalar_lea.hbm %s1087_s1, 256 }
   0xf   : > { %p602_p9 = pneg %p893_p8  ;;  %s144_s25 = sshll.u32 %s825_s24, 4  ;;  %s908_s25 = int_to_ptr.vmem [resolvable:$true] %s144_s25 }
  0x10   : > { %p667_p12 = scmp.ne.s32.totalorder %s1087_s1, %s666_s28  ;;  %p673_p5 = scmp.lt.u32.totalorder %s666_s28, %s1087_s1 }
  0x11   : > { %p904_p11 = pnand %p602_p9, %p1090_p1 }
  0x13   : > { %p668_p13 = pneg %p904_p11 }
  0x15   : > { %p669_p0 = pnand %p668_p13, %p667_p12 }
  0x17   : > { %p670_p3 = pneg %p669_p0 }
  0x19   : > { %p675_p7 = pnand %p673_p5, %p670_p3 }
  0x1b   : > { %678 = shalt.err (!%p675_p7)
}
  0x1c   : > { %s679_s6 = scalar_lea.vmem %s897_s22, 256  ;;  %p687_p2 = scmp.lt.s32.totalorder %s897_s22, %s897_s22 }
  0x1d   : > { %p680_p9 = scmp.ne.s32.totalorder %s897_s22, %s679_s6  ;;  %p688_p12 = scmp.lt.s32.totalorder %s679_s6, %s679_s6 }
  0x1f   : > { %p682_p10 = pnand %p680_p9, %p668_p13  ;;  %p689_p0 = por %p688_p12, %p687_p2 }
  0x21   : > { %p683_p1 = pneg %p682_p10 }
  0x23   : > { %p690_p6 = pnand %p689_p0, %p683_p1 }
  0x25   : > { %693 = shalt.err (!%p690_p6)
}
  0x26   : > { %s826_s7 = smov 128   ;;  %s827_s8 = smov 8  }
  0x27   : > { %605 = dma.hbm_to_vmem [thread:$0]  (!%p904_p11), %s1087_s1, 256, %s897_s22, [#allocation6], %s826_s7, %s826_s7, %s827_s8  }
  0x28   : > { %s694_s21 = scalar_lea.hbm %s1088_s2, 2048 }
  0x29   : > { %p695_p2 = scmp.ne.s32.totalorder %s1088_s2, %s694_s21  ;;  %p701_p10 = scmp.lt.u32.totalorder %s694_s21, %s1088_s2 }
  0x2b   : > { %p697_p1 = pnand %p695_p2, %p668_p13 }
  0x2d   : > { %p698_p6 = pneg %p697_p1 }
  0x2f   : > { %p703_p3 = pnand %p701_p10, %p698_p6 }
  0x31   : > { %706 = shalt.err (!%p703_p3)
}
  0x32   : > { %s707_s22 = scalar_lea.vmem %s908_s25, 2048  ;;  %p715_p12 = scmp.lt.s32.totalorder %s908_s25, %s908_s25 }
  0x33   : > { %p708_p5 = scmp.ne.s32.totalorder %s908_s25, %s707_s22  ;;  %p716_p0 = scmp.lt.s32.totalorder %s707_s22, %s707_s22 }
  0x35   : > { %p710_p7 = pnand %p708_p5, %p668_p13  ;;  %p717_p2 = por %p716_p0, %p715_p12 }
  0x37   : > { %p711_p9 = pneg %p710_p7 }
  0x39   : > { %p718_p1 = pnand %p717_p2, %p711_p9 }
  0x3b   : > { %721 = shalt.err (!%p718_p1)
}
  0x3c   : > { %608 = dma.hbm_to_vmem [thread:$0]  (!%p904_p11), %s1088_s2, 2048, %s908_s25, [#allocation6], %s826_s7, %s826_s7, %s827_s8  }
  0x3d   : > { %s963_s4 = sadd.s32 1, %s822_s15   ;;  %s27_s23 = sadd.s32 1, %s818_s14 }
  0x3e   : > { %s24_s5 = ssub.s32 %s822_s15, %s963_s4  ;;  %p34_p13 = scmp.ne.s32.totalorder %s818_s14, %s814_s13 }
  0x3f   : > { %p25_p6 = scmp.eq.s32.totalorder %s24_s5, 0  ;;  %p35_p10 = scmp.eq.s32.totalorder %s822_s15, 0 }
  0x40   : > { %p1097_p3 = scmp.eq.s32.totalorder %s874_s16, 1  ;;  %p619_p7 = scmp.lt.s32.totalorder %s822_s15, 2 }
  0x41   : > { %s979_s9 = scalar_select %p25_p6, %s818_s14, %s27_s23  }
  0x42   : > { %p973_p5 = por %p1097_p3, %p34_p13  ;;  %p36_p9 = por %p35_p10, %p34_p13 }
  0x43   : > { %s158_s10 = sand.u32 1, %s818_s14   ;;  %s490_s25 = sshll.u32 %s822_s15, 7 }
  0x44   : > { %s1098_s6 = scalar_select %p973_p5, 1, 0 }
  0x45   : > { %s489_s11 = sshll.u32 %s158_s10, 3  ;;  %s986_s17 = scalar_lea.hbm %s1086_s0, %s490_s25 }
  0x46   : > { %s162_s21 = scalar_lea.vmem [#allocation2], %s489_s11  ;;  %p990_p11 = pnand %p619_p7, %p36_p9 }
  0x47   : > { %s169_s24 = sshll.u32 %s162_s21, 4  ;;  %s159_s27 = scalar_lea.sflag [#allocation3], %s158_s10  ;;  %s988_s24 = int_to_ptr.vmem [resolvable:$true] %s169_s24 }
  0x48   : > { %s722_s28 = scalar_lea.hbm %s986_s17, 128  ;;  %p724_p0 = pneg %p990_p11 }
  0x49   : > { %p723_p12 = scmp.ne.s32.totalorder %s986_s17, %s722_s28  ;;  %s727_s30 = scalar_lea.hbm %s1086_s0, 256 }
  0x4a   : > { %p728_p13 = scmp.lt.u32.totalorder %s986_s17, %s1086_s0  ;;  %p729_p6 = scmp.lt.u32.totalorder %s727_s30, %s722_s28 }
  0x4b   : > { %p725_p2 = pnand %p724_p0, %p723_p12  ;;  %p731_p3 = scmp.lt.u32.totalorder %s722_s28, %s986_s17 }
  0x4c   : > { %p730_p10 = por %p729_p6, %p728_p13 }
  0x4d   : > { %p726_p1 = pneg %p725_p2 }
  0x4e   : > { %p732_p7 = por %p731_p3, %p730_p10 }
  0x50   : > { %p733_p9 = pnand %p732_p7, %p726_p1 }
  0x52   : > { %736 = shalt.err (!%p733_p9)
}
  0x53   : > { %s737_s10 = scalar_lea.vmem %s988_s24, 128  ;;  %s828_s11 = smov [#allocation2]  }
  0x54   : > { %p738_p12 = scmp.ne.s32.totalorder %s988_s24, %s737_s10  ;;  %s742_s25 = sshll.u32 %s828_s11, 4  ;;  %s743_s25 = int_to_ptr.vmem [resolvable:$false] %s742_s25 }
  0x55   : > { %s744_s7 = scalar_lea.vmem %s743_s25, 256  ;;  %p745_p4 = scmp.lt.s32.totalorder %s988_s24, %s743_s25 }
  0x56   : > { %p740_p2 = pnand %p738_p12, %p724_p0  ;;  %p746_p13 = scmp.lt.s32.totalorder %s744_s7, %s737_s10 }
  0x58   : > { %p741_p5 = pneg %p740_p2  ;;  %p747_p6 = por %p746_p13, %p745_p4 }
  0x5a   : > { %p748_p10 = pnand %p747_p6, %p741_p5 }
  0x5c   : > { %751 = shalt.err (!%p748_p10)
}
  0x5d   : > { %612 = dma.hbm_to_vmem [thread:$0]  (!%p990_p11), %s986_s17, 128, %s988_s24, %s159_s27  }
  0x5e   : > { %178 = sbr.rel (%p893_p8) target bundleno = 571 (0x23b), region = 32  ;;  %s1022_s8 = sand.u32 (!%p893_p8), 1, %s814_s13  }
  0x5f   : > { %s492_s21 = sshll.u32 (!%p893_p8), %s1022_s8, 3  ;;  %s181_s28 = scalar_lea.sflag (!%p893_p8), [#allocation3], %s1022_s8 }
  0x60   : > { %s184_s22 = scalar_lea.vmem (!%p893_p8), [#allocation2], %s492_s21  ;;  %p1100_p4 = scmp.ne.s32.totalorder (!%p893_p8), %s1093_s18, 0 }
  0x65   : > { %797 = dma.done.wait (%p1100_p4), %s181_s28, 128  }
  0x66   : > { %799 = vsyncadd (%p1100_p4), %s181_s28, 4294967168  ;;  %p1101_p5 = scmp.eq.s32.totalorder %s874_s16, 0 }
  0x68   : > { %801 = dma.done.wait (%p1101_p5), [#allocation6], 2304   ;;  %p1102_p8 = pmov %p1101_p5 }
  0x69   : > { %v829_v0 = vmov 0.0|0.0   ;;  %vm830_vm0 = vmmov 0   ;;  %v831_v1 = vmov 0.0   ;;  %v216_v2 = vld [vmem:[#allocation5] sm:$0xff]  ;;  %v217_v3 = vld [vmem:[#allocation5 + $0x8] sm:$0xff]  ;;  %v293_v5 = vld [vmem:[#allocation7] sm:$0xff] }
  0x6a   : > { %803 = vsyncadd (%p1102_p8), [#allocation6], 4294964992  ;;  %563 = vmatprep.subr.bf16.mxu0 %v829_v0  ;;  %525 = vmatprep.mubr.msk.f32.mxu0 %vm830_vm0, %v831_v1  ;;  %v564_v4 = vpack.c.bf16 %v217_v3, %v216_v2  ;;  %v294_v6 = vld [vmem:[#allocation7 + $0x8] sm:$0xff]  ;;  %v295_v7 = vld [vmem:[#allocation7 + $0x10] sm:$0xff]  ;;  %vm218_vm1 = vcmask 130048   ;;  %s498_s18 = sshll.u32 %s874_s16, 7 }
  0x6b   : > { %566 = vmatprep.subr.bf16.mxu1 %v829_v0  ;;  %560 = vmatprep.mubr.msk.f32.mxu1 %vm830_vm0, %v831_v1  ;;  %v567_v8 = vpack.c.bf16 %v294_v6, %v293_v5  ;;  %v296_v9 = vld [vmem:[#allocation7 + $0x18] sm:$0xff]  ;;  %v215_v10 = vld [vmem:[%s184_s22] sm:$0xff]  ;;  %v299_v15 = vld [vmem:[#allocation7 + $0x30] sm:$0xff]  ;;  %s214_s20 = scalar_lea.vmem [#allocation8], %s492_s21  ;;  %s1042_s27 = scalar_lea.hbm %s1089_s3, %s498_s18 }
  0x6c   : > { %565 = vmatpush3.bf16.msra.mxu0 %v564_v4  ;;  %v570_v11 = vpack.c.bf16 %v296_v9, %v295_v7  ;;  %v297_v12 = vld [vmem:[#allocation7 + $0x20] sm:$0xff]  ;;  %v298_v13 = vld [vmem:[#allocation7 + $0x28] sm:$0xff]  ;;  %v300_v16 = vld [vmem:[#allocation7 + $0x38] sm:$0xff]  ;;  %s395_s17 = sshll.u32 %s214_s20, 4  ;;  %s382_s29 = scalar_lea.sflag [#allocation4], %s1022_s8  ;;  %s1044_s17 = int_to_ptr.vmem [resolvable:$true] %s395_s17 }
  0x6d   : > { %568 = vmatpush3.bf16.msra.mxu1 %v567_v8  ;;  %v573_v14 = vpack.c.bf16 %v298_v13, %v297_v12  ;;  %v576_v17 = vpack.c.bf16 %v300_v16, %v299_v15  ;;  %v301_v18 = vld [vmem:[#allocation7 + $0x40] sm:$0xff]  ;;  %v302_v19 = vld [vmem:[#allocation7 + $0x48] sm:$0xff]  ;;  %v303_v21 = vld [vmem:[#allocation7 + $0x50] sm:$0xff]  ;;  %s752_s30 = scalar_lea.vmem %s1044_s17, 128  ;;  %p1103_p0 = scmp.ne.s32.totalorder %s1098_s6, 0 }
  0x6e   : > { %569 = vmatprep.subr.bf16.mxu1 %v829_v0  ;;  %v579_v20 = vpack.c.bf16 %v302_v19, %v301_v18  ;;  %v304_v22 = vld [vmem:[#allocation7 + $0x58] sm:$0xff]  ;;  %v305_v24 = vld [vmem:[#allocation7 + $0x60] sm:$0xff]  ;;  %v306_v25 = vld [vmem:[#allocation7 + $0x68] sm:$0xff]  ;;  %p753_p11 = scmp.ne.s32.totalorder %s1044_s17, %s752_s30  ;;  %s832_s16 = smov [#allocation8]  }
  0x6f   : > { %526 = vmatmul.mubr.msk.f32.vlgmr.msra.gmra.mrb[0].mxu0 %vm218_vm1, %v215_v10  ;;  %v582_v23 = vpack.c.bf16 %v304_v22, %v303_v21  ;;  %v585_v26 = vpack.c.bf16 %v306_v25, %v305_v24  ;;  %v307_v27 = vld [vmem:[#allocation7 + $0x70] sm:$0xff]  ;;  %v308_v28 = vld [vmem:[#allocation7 + $0x78] sm:$0xff]  ;;  %s756_s23 = sshll.u32 %s832_s16, 4  ;;  %s757_s23 = int_to_ptr.vmem [resolvable:$false] %s756_s23 }
  0x70   : > { %v588_v29 = vpack.c.bf16 %v308_v28, %v307_v27  ;;  %p754_p1 = pnand %p753_p11, %p1103_p0  ;;  %s758_s5 = scalar_lea.vmem %s757_s23, 256 }
  0x71   : > { %571 = vmatpush3.bf16.msra.mxu1 %v570_v11  ;;  %p759_p7 = scmp.lt.s32.totalorder %s1044_s17, %s757_s23  ;;  %p760_p9 = scmp.lt.s32.totalorder %s758_s5, %s752_s30 }
  0x72   : > { %572 = vmatprep.subr.bf16.mxu1 %v829_v0  ;;  %p755_p3 = pneg %p754_p1 }
  0x73   : > { %p761_p12 = por %p760_p9, %p759_p7 }
  0x75   : > { %574 = vmatpush3.bf16.msra.mxu1 %v573_v14  ;;  %p762_p2 = pnand %p761_p12, %p755_p3 }
  0x76   : > { %575 = vmatprep.subr.bf16.mxu1 %v829_v0 }
  0x79   : > { %577 = vmatpush3.bf16.msra.mxu1 %v576_v17 }
  0x7a   : > { %578 = vmatprep.subr.bf16.mxu1 %v829_v0 }
  0x7d   : > { %580 = vmatpush3.bf16.msra.mxu1 %v579_v20 }
  0x7e   : > { %581 = vmatprep.subr.bf16.mxu1 %v829_v0 }
  0x81   : > { %583 = vmatpush3.bf16.msra.mxu1 %v582_v23 }
  0x82   : > { %584 = vmatprep.subr.bf16.mxu1 %v829_v0 }
  0x85   : > { %586 = vmatpush3.bf16.msra.mxu1 %v585_v26 }
  0x86   : > { %587 = vmatprep.subr.bf16.mxu1 %v829_v0 }
  0x89   : > { %589 = vmatpush3.bf16.msra.mxu1 %v588_v29 }
 0x142   : > { %v288_v30 = vpop.f32.mrb[0].mxu0 }
 0x143   : > { %662 = vtanh.f32 %v288_v30  ;;  %v527_v31 = vpop.f32.mrb[1].mxu0 }
 0x14d   : > { %v663_v32 = vpop.eup %662 }
 0x14e   : > { %561 = vmatmul.mubr.f32.vlgmr.msra.gmra.mrb[0].mxu1 %v663_v32 }
 0x221   : > { %v375_v33 = vpop.f32.mrb[0].mxu1 }
 0x222   : > { %664 = vtanh.f32 %v375_v33  ;;  %v562_v34 = vpop.f32.mrb[1].mxu1 }
 0x22c   : > { %v665_v35 = vpop.eup %664 }
 0x22d   : > { %380 = vst [vmem:[%s214_s20] sm:$0xff] %v665_v35 }
 0x22e   : > { %765 = shalt.err (!%p762_p2)
}
 0x22f   : > { %s766_s10 = scalar_lea.hbm %s1042_s27, 128  ;;  %s770_s7 = scalar_lea.hbm %s1089_s3, 256 }
 0x230   : > { %p767_p13 = scmp.ne.s32.totalorder %s1042_s27, %s766_s10  ;;  %p771_p4 = scmp.lt.u32.totalorder %s1042_s27, %s1089_s3 }
 0x231   : > { %p772_p5 = scmp.lt.u32.totalorder %s770_s7, %s766_s10  ;;  %p774_p11 = scmp.lt.u32.totalorder %s766_s10, %s1042_s27 }
 0x232   : > { %p768_p6 = pnand %p767_p13, %p1103_p0 }
 0x233   : > { %p773_p8 = por %p772_p5, %p771_p4 }
 0x234   : > { %p769_p10 = pneg %p768_p6 }
 0x235   : > { %p775_p1 = por %p774_p11, %p773_p8 }
 0x237   : > { %p776_p3 = pnand %p775_p1, %p769_p10 }
 0x239   : > { %779 = shalt.err (!%p776_p3)
}
 0x23a   : > { %600 = dma.vmem_to_hbm [thread:$0]  (%p1103_p0), %s1044_s17, 128, %s1042_s27, %s382_s29  }
 0x23b PF: > { %s407_s28 = sand.u32 1, %s810_s12   ;;  %p1104_p7 = scmp.ne.s32.totalorder %s1094_s19, 0 }
 0x23c   : > { %p1105_p9 = scmp.ge.s32.totalorder %s822_s15, 2  ;;  %s408_s22 = scalar_lea.sflag [#allocation4], %s407_s28 }
 0x23e   : > { %p614_p12 = pnand %p1105_p9, %p1104_p7 }
 0x240   : > { %805 = dma.done.wait (!%p614_p12), %s408_s22, 128  }
 0x241   : > { %807 = vsyncadd (!%p614_p12), %s408_s22, 4294967168  ;;  %p17_p2 = scmp.ge.s32.totalorder %s963_s4, 4   ;;  %s1106_s12 = smov %s814_s13 }
 0x242   : > { %s1107_s13 = smov %s818_s14  ;;  %s1108_s14 = smov %s979_s9 }
 0x243   : > { %s1109_s15 = smov %s963_s4  ;;  %19 = sbr.rel (!%p17_p2) target bundleno = 6 (0x6), region = 85 }
 0x24a   :  { %413 = vsyncpa [#allocation3], 1 }
 0x24b   :  { %415 = vsyncpa [#allocation3 + $0x1], 1 }
 0x24c   :  { %416 = vsyncpa [#allocation6], 1 }
 0x24d   :  { %417 = vsyncpa [#allocation4], 1 }
 0x24e   :  { %419 = vsyncpa [#allocation4 + $0x1], 1 }

</bundles_post_ra>
